<compile_context>
chip_gen: v7x
topology: tpu7x:2x2x1
jax: 0.10.0
libtpu: 0.0.40
codegen_flags: <defaults>
</compile_context>

<pallas_src>
import jax
import jax.numpy as jnp
from jax.experimental import pallas as pl
from jax.experimental.pallas import tpu as pltpu

NUM_EMBEDDINGS = 50  # nn.Embedding(50, num_pos_feats)


# ---------------------------------------------------------------------------
# In-kernel replication helpers (pure vreg compute, exact data movement).
# ---------------------------------------------------------------------------
def _replicate_cols(col_w, h):
    """(F, W) -> (F, H*W) with out[:, j*W + i] = col_w[:, i].

    One multi-operand lane-concatenate of H copies (no reshape, no per-piece
    store); Mosaic handles unaligned piece widths inside vregs.
    """
    return jnp.concatenate([col_w] * h, axis=1)


def _replicate_rows(row_h, w):
    """(F, H) -> (F, H*W) with out[:, j*W + i] = row_h[:, j].

    Each column j is splatted across W lanes, then a single lane-concatenate
    builds the full value BEFORE the (single) store.  All of this is VPU/XLU
    filler that hides under the output DMA; there are no masked stores.
    """
    f, h = row_h.shape
    pieces = [jnp.broadcast_to(row_h[:, j:j + 1], (f, w)) for j in range(h)]
    return jnp.concatenate(pieces, axis=1)


# ---------------------------------------------------------------------------
# Kernels.
# ---------------------------------------------------------------------------
def _pos_embed_full_kernel(col_w_ref, row_h_ref, out_ref):
    """Single grid step: writes the whole (2F, H*W) block with one dense store."""
    h = row_h_ref.shape[1]
    w = col_w_ref.shape[1]
    col_full = _replicate_cols(col_w_ref[...], h)     # (F, H*W)
    row_full = _replicate_rows(row_h_ref[...], w)     # (F, H*W)
    out_ref[...] = jnp.concatenate([col_full, row_full], axis=0)


def _pos_embed_half_kernel(col_w_ref, row_h_ref, out_ref):
    """Two-step grid (v7x): each step writes one (F, H*W) channel half."""
    h = row_h_ref.shape[1]
    w = col_w_ref.shape[1]
    half = pl.program_id(0)          # 0 -> x/col half, 1 -> y/row half

    @pl.when(half == 0)
    def _():
        out_ref[...] = _replicate_cols(col_w_ref[...], h)

    @pl.when(half == 1)
    def _():
        out_ref[...] = _replicate_rows(row_h_ref[...], w)


def _has_two_tensorcores():
    """True for v7x-class devices (2 TensorCores/chip); False otherwise."""
    try:
        kind = jax.devices()[0].device_kind.lower()
    except Exception:
        return False
    return "v7" in kind


# ---------------------------------------------------------------------------
# Wrapper (forward pass of PositionEmbeddingLearned).
# ---------------------------------------------------------------------------
def position_embedding_learned(x, row_embed_w, col_embed_w, *, split_halves=None):
    """x: (B, C, H, W) (only its shape is used), tables: (50, F). Returns (B, 2F, H, W)."""
    b = x.shape[0]
    h, w = int(x.shape[-2]), int(x.shape[-1])
    f = int(row_embed_w.shape[1])

    if col_embed_w.shape[1] != f:
        raise ValueError("row_embed and col_embed must have the same num_pos_feats")
    if h > row_embed_w.shape[0] or w > col_embed_w.shape[0]:
        raise ValueError(
            f"spatial dims ({h}, {w}) exceed embedding table size "
            f"({row_embed_w.shape[0]}, {col_embed_w.shape[0]}); "
            "PositionEmbeddingLearned only supports H, W <= num_embeddings.")

    # Layout plumbing outside the kernel:
    #   embedding(arange(n)) == weight[:n]  -> pre-slice (no unused rows DMA'd)
    #   transpose to (F, len): features on sublanes, spatial on lanes, matching
    #   the lane-dense (2F, H*W) output slab.
    col_w = jnp.transpose(col_embed_w[:w, :]).astype(jnp.float32)   # (F, W)
    row_h = jnp.transpose(row_embed_w[:h, :]).astype(jnp.float32)   # (F, H)

    # Half-block output tiling needs F on an 8-sublane boundary; the full-block
    # (single-step) kernel has no such restriction.  Split only pays on chips
    # with two TensorCores (v7x) -- on v5e/v6e it is pure per-step overhead.
    if split_halves is None:
        split_halves = _has_two_tensorcores() and (f % 8 == 0)
    elif split_halves and f % 8 != 0:
        split_halves = False

    hw = h * w
    if split_halves:
        kernel = _pos_embed_half_kernel
        grid = (2,)
        out_specs = pl.BlockSpec((f, hw), lambda i: (i, 0))
        dims = ("parallel",)          # one channel half per TensorCore
    else:
        kernel = _pos_embed_full_kernel
        grid = (1,)
        out_specs = pl.BlockSpec((2 * f, hw), lambda i: (0, 0))
        dims = ("arbitrary",)

    # VMEM: output block is 2F*H*W*4 B (<= ~5.1 MiB at DETR F=256, 50x50),
    # comfortably under the scoped default on v5e/v6e/v7x.  For much larger
    # feature maps, tile the lane (H*W) axis or raise vmem_limit_bytes.
    flat = pl.pallas_call(
        kernel,
        out_shape=jax.ShapeDtypeStruct((2 * f, hw), jnp.float32),
        grid_spec=pltpu.PrefetchScalarGridSpec(
            num_scalar_prefetch=0,
            grid=grid,
            in_specs=[
                pl.BlockSpec((f, w), lambda i: (0, 0)),
                pl.BlockSpec((f, h), lambda i: (0, 0)),
            ],
            out_specs=out_specs,
        ),
        compiler_params=pltpu.CompilerParams(dimension_semantics=dims),
    )(col_w, row_h)

    # Contiguous trailing-dim reshape (free) + batch broadcast in XLA.  The
    # embedding is batch-independent, so the kernel never recomputes it B
    # times; XLA fuses the broadcast into the consumer (if it ever
    # materializes for huge B, return pos[None] and broadcast at use).
    pos = flat.reshape(2 * f, h, w)
    return jnp.broadcast_to(pos[None], (b, 2 * f, h, w))


# ---------------------------------------------------------------------------
# Pure-JAX reference mirroring the PyTorch forward exactly.
# ---------------------------------------------------------------------------
def _reference(x, row_embed_w, col_embed_w):
    b = x.shape[0]
    h, w = x.shape[-2], x.shape[-1]
    x_emb = col_embed_w[jnp.arange(w)]                 # (W, F)
    y_emb = row_embed_w[jnp.arange(h)]                 # (H, F)
    pos = jnp.concatenate(
        [
            jnp.broadcast_to(x_emb[None, :, :], (h, w, x_emb.shape[-1])),
            jnp.broadcast_to(y_emb[:, None, :], (h, w, y_emb.shape[-1])),
        ],
        axis=-1,
    )                                                  # (H, W, 2F)
    pos = jnp.transpose(pos, (2, 0, 1))[None]          # (1, 2F, H, W)
    return jnp.broadcast_to(pos, (b,) + pos.shape[1:]).astype(jnp.float32)


if __name__ == "__main__":
    key = jax.random.PRNGKey(0)
    k_x, k_row, k_col = jax.random.split(key, 3)

    # Small shapes: batch=2, channels=4, spatial=16x16, num_pos_feats=32.
    num_pos_feats = 32
    x = jax.random.normal(k_x, (2, 4, 16, 16), dtype=jnp.float32)

    # nn.init.uniform_ -> U[0, 1)
    row_embed_w = jax.random.uniform(k_row, (NUM_EMBEDDINGS, num_pos_feats),
                                     dtype=jnp.float32)
    col_embed_w = jax.random.uniform(k_col, (NUM_EMBEDDINGS, num_pos_feats),
                                     dtype=jnp.float32)

    pos = position_embedding_learned(x, row_embed_w, col_embed_w)
    pos = jax.block_until_ready(pos)

    ref = _reference(x, row_embed_w, col_embed_w)
    assert pos.shape == (2, 2 * num_pos_feats, 16, 16), pos.shape
    # Pure data movement -> must be bit-exact.
    assert jnp.array_equal(pos, ref), "mismatch vs reference"

    print("KERNEL_OK")
</pallas_src>

<mosaic_0001>
module attributes {stable_mosaic.version = 11 : i64} {
  func.func @_pos_embed_full_kernel(%arg0: i32, %arg1: memref<32x16xf32, #tpu.memory_space<vmem>>, %arg2: memref<32x16xf32, #tpu.memory_space<vmem>>, %arg3: memref<64x256xf32, #tpu.memory_space<vmem>>) attributes {dimension_semantics = [#tpu.dimension_semantics<arbitrary>], iteration_bounds = array<i64: 1>, scalar_prefetch = 0 : i64, scratch_operands = 0 : i64, tpu.core_type = #tpu.core_type<tc>, window_params = [{pipeline_mode = #tpu.pipeline_mode<synchronous>, transform_indices = @transform_0, window_bounds = array<i64: 32, 16>}, {pipeline_mode = #tpu.pipeline_mode<synchronous>, transform_indices = @transform_1, window_bounds = array<i64: 32, 16>}, {pipeline_mode = #tpu.pipeline_mode<synchronous>, transform_indices = @transform_2, window_bounds = array<i64: 64, 256>}]} {
    %c0 = arith.constant 0 : index
    %c0_0 = arith.constant 0 : index
    %0 = vector.load %arg1[%c0, %c0_0] : memref<32x16xf32, #tpu.memory_space<vmem>>, vector<32x16xf32>
    %1 = tpu.concatenate %0, %0, %0, %0, %0, %0, %0, %0, %0, %0, %0, %0, %0, %0, %0, %0 in 1 : vector<32x16xf32>, vector<32x16xf32>, vector<32x16xf32>, vector<32x16xf32>, vector<32x16xf32>, vector<32x16xf32>, vector<32x16xf32>, vector<32x16xf32>, vector<32x16xf32>, vector<32x16xf32>, vector<32x16xf32>, vector<32x16xf32>, vector<32x16xf32>, vector<32x16xf32>, vector<32x16xf32>, vector<32x16xf32> -> vector<32x256xf32>
    %c0_1 = arith.constant 0 : index
    %c0_2 = arith.constant 0 : index
    %2 = vector.load %arg2[%c0_1, %c0_2] : memref<32x16xf32, #tpu.memory_space<vmem>>, vector<32x16xf32>
    %3 = vector.extract_strided_slice %2 {offsets = [0, 0], sizes = [32, 1], strides = [1, 1]} : vector<32x16xf32> to vector<32x1xf32>
    %4 = vector.shape_cast %3 : vector<32x1xf32> to vector<32x1xf32>
    %5 = vector.broadcast %4 : vector<32x1xf32> to vector<32x16xf32>
    %6 = vector.extract_strided_slice %2 {offsets = [0, 1], sizes = [32, 1], strides = [1, 1]} : vector<32x16xf32> to vector<32x1xf32>
    %7 = vector.shape_cast %6 : vector<32x1xf32> to vector<32x1xf32>
    %8 = vector.broadcast %7 : vector<32x1xf32> to vector<32x16xf32>
    %9 = vector.extract_strided_slice %2 {offsets = [0, 2], sizes = [32, 1], strides = [1, 1]} : vector<32x16xf32> to vector<32x1xf32>
    %10 = vector.shape_cast %9 : vector<32x1xf32> to vector<32x1xf32>
    %11 = vector.broadcast %10 : vector<32x1xf32> to vector<32x16xf32>
    %12 = vector.extract_strided_slice %2 {offsets = [0, 3], sizes = [32, 1], strides = [1, 1]} : vector<32x16xf32> to vector<32x1xf32>
    %13 = vector.shape_cast %12 : vector<32x1xf32> to vector<32x1xf32>
    %14 = vector.broadcast %13 : vector<32x1xf32> to vector<32x16xf32>
    %15 = vector.extract_strided_slice %2 {offsets = [0, 4], sizes = [32, 1], strides = [1, 1]} : vector<32x16xf32> to vector<32x1xf32>
    %16 = vector.shape_cast %15 : vector<32x1xf32> to vector<32x1xf32>
    %17 = vector.broadcast %16 : vector<32x1xf32> to vector<32x16xf32>
    %18 = vector.extract_strided_slice %2 {offsets = [0, 5], sizes = [32, 1], strides = [1, 1]} : vector<32x16xf32> to vector<32x1xf32>
    %19 = vector.shape_cast %18 : vector<32x1xf32> to vector<32x1xf32>
    %20 = vector.broadcast %19 : vector<32x1xf32> to vector<32x16xf32>
    %21 = vector.extract_strided_slice %2 {offsets = [0, 6], sizes = [32, 1], strides = [1, 1]} : vector<32x16xf32> to vector<32x1xf32>
    %22 = vector.shape_cast %21 : vector<32x1xf32> to vector<32x1xf32>
    %23 = vector.broadcast %22 : vector<32x1xf32> to vector<32x16xf32>
    %24 = vector.extract_strided_slice %2 {offsets = [0, 7], sizes = [32, 1], strides = [1, 1]} : vector<32x16xf32> to vector<32x1xf32>
    %25 = vector.shape_cast %24 : vector<32x1xf32> to vector<32x1xf32>
    %26 = vector.broadcast %25 : vector<32x1xf32> to vector<32x16xf32>
    %27 = vector.extract_strided_slice %2 {offsets = [0, 8], sizes = [32, 1], strides = [1, 1]} : vector<32x16xf32> to vector<32x1xf32>
    %28 = vector.shape_cast %27 : vector<32x1xf32> to vector<32x1xf32>
    %29 = vector.broadcast %28 : vector<32x1xf32> to vector<32x16xf32>
    %30 = vector.extract_strided_slice %2 {offsets = [0, 9], sizes = [32, 1], strides = [1, 1]} : vector<32x16xf32> to vector<32x1xf32>
    %31 = vector.shape_cast %30 : vector<32x1xf32> to vector<32x1xf32>
    %32 = vector.broadcast %31 : vector<32x1xf32> to vector<32x16xf32>
    %33 = vector.extract_strided_slice %2 {offsets = [0, 10], sizes = [32, 1], strides = [1, 1]} : vector<32x16xf32> to vector<32x1xf32>
    %34 = vector.shape_cast %33 : vector<32x1xf32> to vector<32x1xf32>
    %35 = vector.broadcast %34 : vector<32x1xf32> to vector<32x16xf32>
    %36 = vector.extract_strided_slice %2 {offsets = [0, 11], sizes = [32, 1], strides = [1, 1]} : vector<32x16xf32> to vector<32x1xf32>
    %37 = vector.shape_cast %36 : vector<32x1xf32> to vector<32x1xf32>
    %38 = vector.broadcast %37 : vector<32x1xf32> to vector<32x16xf32>
    %39 = vector.extract_strided_slice %2 {offsets = [0, 12], sizes = [32, 1], strides = [1, 1]} : vector<32x16xf32> to vector<32x1xf32>
    %40 = vector.shape_cast %39 : vector<32x1xf32> to vector<32x1xf32>
    %41 = vector.broadcast %40 : vector<32x1xf32> to vector<32x16xf32>
    %42 = vector.extract_strided_slice %2 {offsets = [0, 13], sizes = [32, 1], strides = [1, 1]} : vector<32x16xf32> to vector<32x1xf32>
    %43 = vector.shape_cast %42 : vector<32x1xf32> to vector<32x1xf32>
    %44 = vector.broadcast %43 : vector<32x1xf32> to vector<32x16xf32>
    %45 = vector.extract_strided_slice %2 {offsets = [0, 14], sizes = [32, 1], strides = [1, 1]} : vector<32x16xf32> to vector<32x1xf32>
    %46 = vector.shape_cast %45 : vector<32x1xf32> to vector<32x1xf32>
    %47 = vector.broadcast %46 : vector<32x1xf32> to vector<32x16xf32>
    %48 = vector.extract_strided_slice %2 {offsets = [0, 15], sizes = [32, 1], strides = [1, 1]} : vector<32x16xf32> to vector<32x1xf32>
    %49 = vector.shape_cast %48 : vector<32x1xf32> to vector<32x1xf32>
    %50 = vector.broadcast %49 : vector<32x1xf32> to vector<32x16xf32>
    %51 = tpu.concatenate %5, %8, %11, %14, %17, %20, %23, %26, %29, %32, %35, %38, %41, %44, %47, %50 in 1 : vector<32x16xf32>, vector<32x16xf32>, vector<32x16xf32>, vector<32x16xf32>, vector<32x16xf32>, vector<32x16xf32>, vector<32x16xf32>, vector<32x16xf32>, vector<32x16xf32>, vector<32x16xf32>, vector<32x16xf32>, vector<32x16xf32>, vector<32x16xf32>, vector<32x16xf32>, vector<32x16xf32>, vector<32x16xf32> -> vector<32x256xf32>
    %52 = tpu.concatenate %1, %51 in 0 : vector<32x256xf32>, vector<32x256xf32> -> vector<64x256xf32>
    %c0_3 = arith.constant 0 : index
    %c0_4 = arith.constant 0 : index
    %53 = vector.load %arg3[%c0_3, %c0_4] : memref<64x256xf32, #tpu.memory_space<vmem>>, vector<64x256xf32>
    tpu.vector_store %arg3[%c0_3, %c0_4], %52 {strides = array<i32>} : memref<64x256xf32, #tpu.memory_space<vmem>>, vector<64x256xf32>,
    return
  }
  func.func @transform_0(%arg0: i32) -> (i32, i32) {
    %c0_i32 = arith.constant 0 : i32
    %c0_i32_0 = arith.constant 0 : i32
    %c0_i32_1 = arith.constant 0 : i32
    return %c0_i32, %c0_i32_0 : i32, i32
  }
  func.func @transform_1(%arg0: i32) -> (i32, i32) {
    %c0_i32 = arith.constant 0 : i32
    %c0_i32_0 = arith.constant 0 : i32
    %c0_i32_1 = arith.constant 0 : i32
    return %c0_i32, %c0_i32_0 : i32, i32
  }
  func.func @transform_2(%arg0: i32) -> (i32, i32) {
    %c0_i32 = arith.constant 0 : i32
    %c0_i32_0 = arith.constant 0 : i32
    %c0_i32_1 = arith.constant 0 : i32
    return %c0_i32, %c0_i32_0 : i32, i32
  }
}

</mosaic_0001>

<bundles_post_ra>
// kernel: tpu_custom_call.1
= control target key start
LH: loop header
LB: loop body
LE: loop exit
PB: predicated region body
PF: predicated region fallthrough
CT: control target
= control target key end

     0   :  { %s572_s13 = smov 16   ;;  %v573_v4 = vmov 0   ;;  %s877_s0 = inlined_call_operand.vmem [shape: f32[32,16], index: 0, kind: input, shape index: {}]   ;;  %s878_s1 = inlined_call_operand.vmem [shape: f32[32,16], index: 1, kind: input, shape index: {}]   ;;  %s879_s2 = inlined_call_operand.hbm [shape: f32[64,256], index: 2, kind: output, shape index: {}]  }
   0x1   :  { %v615_v0 = vld [vmem:[%s877_s0 + $0x10] sm:$0xff]  ;;  %v620_v1 = vld [vmem:[%s877_s0] sm:$0xff]  ;;  %v629_v2 = vld [vmem:[%s877_s0 + $0x18] sm:$0xff]  ;;  %517 = vset.pattern.permute.xlu1 %v573_v4  ;;  %516 = vset.pattern.permute.xlu0 %v573_v4 }
   0x2   :  { %24 = vrot.lane.b32.xlu1 %v615_v0, %s572_s13  ;;  %20 = vrot.lane.b32.xlu0 %v620_v1, %s572_s13  ;;  %v634_v3 = vld [vmem:[%s877_s0 + $0x8] sm:$0xff] }
   0x3   :  { %7 = vsyncpa [#allocation3], 0  ;;  %s574_s18 = smov 32   ;;  %s575_s0 = smov 48   ;;  %v667_v5 = vld [vmem:[%s878_s1 + $0x8] sm:$0xff]  ;;  %v672_v6 = vld [vmem:[%s878_s1] sm:$0xff] }
   0x4   :  { %s576_s19 = smov 64   ;;  %s577_s20 = smov 80   ;;  %v679_v7 = vld [vmem:[%s878_s1 + $0x10] sm:$0xff]  ;;  %v684_v8 = vld [vmem:[%s878_s1 + $0x18] sm:$0xff]  ;;  %v580_v9 = vmov 1   ;;  %v581_v10 = vmov 2  }
   0x5   :  { %s578_s21 = smov 96   ;;  %s579_s22 = smov 112   ;;  %v582_v11 = vmov 3   ;;  %v583_v12 = vmov 4   ;;  %v584_v13 = vmov 5   ;;  %v585_v14 = vmov 6  }
   0x6   :  { %26 = vrot.lane.b32.xlu1 %v629_v2, %s572_s13  ;;  %22 = vrot.lane.b32.xlu0 %v634_v3, %s572_s13  ;;  %v586_v15 = vmov 7   ;;  %v587_v16 = vmov 8   ;;  %v588_v21 = vmov 9   ;;  %v589_v24 = vmov 10   ;;  %s595_s1 = smov [#allocation2]  }
   0x7   :  { %v590_v31 = vmov 11   ;;  %v591_v34 = vmov 12   ;;  %vm104_vm0 = vcmask 130048   ;;  %vm109_vm1 = vcmask 261120   ;;  %s480_s3 = sshll.u32 %s595_s1, 4  ;;  %s481_s3 = int_to_ptr.vmem [resolvable:$true] %s480_s3 }
   0x8   :  { %v592_v41 = vmov 13   ;;  %vm114_vm2 = vcmask 392192   ;;  %vm119_vm3 = vcmask 523264   ;;  %v593_v45 = vmov 14   ;;  %s548_s4 = scalar_lea.vmem %s481_s3, 2048  ;;  %p553_p1 = scmp.lt.s32.totalorder %s481_s3, %s481_s3 }
   0x9   :  { %vm124_vm4 = vcmask 654336   ;;  %vm129_vm5 = vcmask 785408   ;;  %vm134_vm6 = vcmask 916480   ;;  %p549_p0 = scmp.ne.s32.totalorder %s481_s3, %s548_s4  ;;  %p554_p2 = scmp.lt.s32.totalorder %s548_s4, %s548_s4 }
   0xa   :  { %34 = vrot.lane.b32.xlu1 %v634_v3, %s574_s18  ;;  %32 = vrot.lane.b32.xlu0 %v620_v1, %s574_s18 }
   0xb   :  { %p555_p3 = por %p554_p2, %p553_p1 }
   0xd   :  { %p556_p4 = pnand %p555_p3, %p549_p0 }
   0xe   :  { %38 = vrot.lane.b32.xlu1 %v629_v2, %s574_s18  ;;  %36 = vrot.lane.b32.xlu0 %v615_v0, %s574_s18 }
  0x12   :  { %46 = vrot.lane.b32.xlu1 %v634_v3, %s575_s0  ;;  %44 = vrot.lane.b32.xlu0 %v620_v1, %s575_s0 }
  0x16   :  { %50 = vrot.lane.b32.xlu1 %v629_v2, %s575_s0  ;;  %48 = vrot.lane.b32.xlu0 %v615_v0, %s575_s0 }
  0x1a   :  { %58 = vrot.lane.b32.xlu1 %v634_v3, %s576_s19  ;;  %56 = vrot.lane.b32.xlu0 %v620_v1, %s576_s19 }
  0x1e   :  { %62 = vrot.lane.b32.xlu1 %v629_v2, %s576_s19  ;;  %60 = vrot.lane.b32.xlu0 %v615_v0, %s576_s19 }
  0x22   :  { %70 = vrot.lane.b32.xlu1 %v634_v3, %s577_s20  ;;  %68 = vrot.lane.b32.xlu0 %v620_v1, %s577_s20 }
  0x26   :  { %74 = vrot.lane.b32.xlu1 %v629_v2, %s577_s20  ;;  %72 = vrot.lane.b32.xlu0 %v615_v0, %s577_s20 }
  0x2a   :  { %82 = vrot.lane.b32.xlu1 %v634_v3, %s578_s21  ;;  %80 = vrot.lane.b32.xlu0 %v620_v1, %s578_s21 }
  0x2e   :  { %86 = vrot.lane.b32.xlu1 %v629_v2, %s578_s21  ;;  %84 = vrot.lane.b32.xlu0 %v615_v0, %s578_s21 }
  0x32   :  { %94 = vrot.lane.b32.xlu1 %v634_v3, %s579_s22  ;;  %92 = vrot.lane.b32.xlu0 %v620_v1, %s579_s22 }
  0x36   :  { %98 = vrot.lane.b32.xlu1 %v629_v2, %s579_s22  ;;  %96 = vrot.lane.b32.xlu0 %v615_v0, %s579_s22 }
  0x3a   :  { %150 = vperm.xlu1 %517, %v667_v5   ;;  %145 = vperm.xlu0 %516, %v672_v6  }
  0x3e   :  { %155 = vperm.xlu1 %517, %v679_v7   ;;  %160 = vperm.xlu0 %516, %v684_v8  }
  0x42   :  { %518 = vset.pattern.permute.xlu1 %v580_v9  ;;  %519 = vset.pattern.permute.xlu0 %v580_v9 }
  0x43   :  { %164 = vperm.xlu1 %518, %v672_v6   ;;  %168 = vperm.xlu0 %519, %v667_v5  }
  0x47   :  { %172 = vperm.xlu1 %518, %v679_v7   ;;  %520 = vset.pattern.permute.xlu0 %v581_v10 }
  0x48   :  { %180 = vperm.xlu0 %520, %v672_v6  }
  0x4b   :  { %176 = vperm.xlu1 %518, %v684_v8  }
  0x4c   :  { %192 = vperm.xlu0 %520, %v684_v8  }
  0x4f   :  { %521 = vset.pattern.permute.xlu1 %v581_v10 }
  0x50   :  { %184 = vperm.xlu1 %521, %v667_v5   ;;  %523 = vset.pattern.permute.xlu0 %v582_v11 }
  0x51   :  { %200 = vperm.xlu0 %523, %v667_v5  }
  0x54   :  { %188 = vperm.xlu1 %521, %v679_v7  }
  0x55   :  { %524 = vset.pattern.permute.xlu0 %v583_v12 }
  0x56   :  { %212 = vperm.xlu0 %524, %v672_v6  }
  0x58   :  { %522 = vset.pattern.permute.xlu1 %v582_v11 }
  0x59   :  { %196 = vperm.xlu1 %522, %v672_v6  }
  0x5a   :  { %224 = vperm.xlu0 %524, %v684_v8  }
  0x5d   :  { %204 = vperm.xlu1 %522, %v679_v7  }
  0x5e   :  { %527 = vset.pattern.permute.xlu0 %v584_v13 }
  0x5f   :  { %232 = vperm.xlu0 %527, %v667_v5  }
  0x61   :  { %208 = vperm.xlu1 %522, %v684_v8  }
  0x63   :  { %528 = vset.pattern.permute.xlu0 %v585_v14 }
  0x64   :  { %244 = vperm.xlu0 %528, %v672_v6  }
  0x65   :  { %525 = vset.pattern.permute.xlu1 %v583_v12 }
  0x66   :  { %216 = vperm.xlu1 %525, %v667_v5  }
  0x68   :  { %256 = vperm.xlu0 %528, %v684_v8  }
  0x6a   :  { %220 = vperm.xlu1 %525, %v679_v7  }
  0x6c   :  { %531 = vset.pattern.permute.xlu0 %v586_v15 }
  0x6d   :  { %264 = vperm.xlu0 %531, %v667_v5  }
  0x6e   :  { %526 = vset.pattern.permute.xlu1 %v584_v13 }
  0x6f   :  { %228 = vperm.xlu1 %526, %v672_v6  }
  0x71   :  { %532 = vset.pattern.permute.xlu0 %v587_v16 }
  0x72   :  { %276 = vperm.xlu0 %532, %v672_v6  }
  0x73   :  { %236 = vperm.xlu1 %526, %v679_v7  }
  0x74   :  { %v711_v17 = vpop.permute.xlu1 %24  ;;  %v21_v18 = vpop.permute.xlu0 %20 }
  0x75   :  { %v105_v37 = vsel %vm104_vm0, %v620_v1, %v21_v18  ;;  %v107_v57 = vsel %vm104_vm0, %v615_v0, %v711_v17 }
  0x76   :  { %288 = vperm.xlu0 %532, %v684_v8  }
  0x77   :  { %240 = vperm.xlu1 %526, %v684_v8  }
  0x78   :  { %v715_v19 = vpop.permute.xlu1 %26  ;;  %v23_v20 = vpop.permute.xlu0 %22 }
  0x79   :  { %v106_v49 = vsel %vm104_vm0, %v634_v3, %v23_v20  ;;  %v108_v58 = vsel %vm104_vm0, %v629_v2, %v715_v19  ;;  %v594_v3 = vmov 15  }
  0x7a   :  { %535 = vset.pattern.permute.xlu0 %v588_v21 }
  0x7b   :  { %529 = vset.pattern.permute.xlu1 %v585_v14  ;;  %296 = vperm.xlu0 %535, %v667_v5  }
  0x7c   :  { %248 = vperm.xlu1 %529, %v667_v5   ;;  %v35_v22 = vpop.permute.xlu1 %34  ;;  %v33_v23 = vpop.permute.xlu0 %32 }
  0x7d   :  { %v110_v40 = vsel %vm109_vm1, %v105_v37, %v33_v23  ;;  %v111_v51 = vsel %vm109_vm1, %v106_v49, %v35_v22 }
  0x7f   :  { %536 = vset.pattern.permute.xlu0 %v589_v24 }
  0x80   :  { %252 = vperm.xlu1 %529, %v679_v7   ;;  %v721_v25 = vpop.permute.xlu1 %38  ;;  %v723_v26 = vpop.permute.xlu0 %36  ;;  %308 = vperm.xlu0 %536, %v672_v6  }
  0x81   :  { %v113_v60 = vsel %vm109_vm1, %v108_v58, %v721_v25  ;;  %v112_v61 = vsel %vm109_vm1, %v107_v57, %v723_v26 }
  0x84   :  { %530 = vset.pattern.permute.xlu1 %v586_v15  ;;  %v47_v27 = vpop.permute.xlu1 %46  ;;  %v45_v28 = vpop.permute.xlu0 %44  ;;  %320 = vperm.xlu0 %536, %v684_v8  }
  0x85   :  { %260 = vperm.xlu1 %530, %v672_v6   ;;  %v115_v44 = vsel %vm114_vm2, %v110_v40, %v45_v28  ;;  %v116_v54 = vsel %vm114_vm2, %v111_v51, %v47_v27 }
  0x88   :  { %v728_v29 = vpop.permute.xlu1 %50  ;;  %v730_v30 = vpop.permute.xlu0 %48  ;;  %539 = vset.pattern.permute.xlu0 %v590_v31 }
  0x89   :  { %268 = vperm.xlu1 %530, %v679_v7   ;;  %328 = vperm.xlu0 %539, %v667_v5   ;;  %v118_v0 = vsel %vm114_vm2, %v113_v60, %v728_v29  ;;  %v117_v2 = vsel %vm114_vm2, %v112_v61, %v730_v30 }
  0x8c   :  { %v59_v32 = vpop.permute.xlu1 %58  ;;  %v57_v33 = vpop.permute.xlu0 %56 }
  0x8d   :  { %272 = vperm.xlu1 %530, %v684_v8   ;;  %540 = vset.pattern.permute.xlu0 %v591_v34  ;;  %v120_v46 = vsel %vm119_vm3, %v115_v44, %v57_v33  ;;  %v121_v55 = vsel %vm119_vm3, %v116_v54, %v59_v32 }
  0x8e   :  { %340 = vperm.xlu0 %540, %v672_v6  }
  0x90   :  { %v63_v35 = vpop.permute.xlu1 %62  ;;  %v61_v36 = vpop.permute.xlu0 %60 }
  0x91   :  { %533 = vset.pattern.permute.xlu1 %v587_v16  ;;  %v123_v10 = vsel %vm119_vm3, %v118_v0, %v63_v35  ;;  %v122_v11 = vsel %vm119_vm3, %v117_v2, %v61_v36 }
  0x92   :  { %280 = vperm.xlu1 %533, %v667_v5   ;;  %352 = vperm.xlu0 %540, %v684_v8  }
  0x94   :  { %v71_v38 = vpop.permute.xlu1 %70  ;;  %v69_v39 = vpop.permute.xlu0 %68 }
  0x95   :  { %v125_v50 = vsel %vm124_vm4, %v120_v46, %v69_v39  ;;  %v126_v59 = vsel %vm124_vm4, %v121_v55, %v71_v38 }
  0x96   :  { %284 = vperm.xlu1 %533, %v679_v7   ;;  %543 = vset.pattern.permute.xlu0 %v592_v41 }
  0x97   :  { %360 = vperm.xlu0 %543, %v667_v5  }
  0x98   :  { %v75_v42 = vpop.permute.xlu1 %74  ;;  %v73_v43 = vpop.permute.xlu0 %72 }
  0x99   :  { %v128_v12 = vsel %vm124_vm4, %v123_v10, %v75_v42  ;;  %v127_v13 = vsel %vm124_vm4, %v122_v11, %v73_v43 }
  0x9a   :  { %534 = vset.pattern.permute.xlu1 %v588_v21 }
  0x9b   :  { %292 = vperm.xlu1 %534, %v672_v6   ;;  %544 = vset.pattern.permute.xlu0 %v593_v45 }
  0x9c   :  { %v83_v47 = vpop.permute.xlu1 %82  ;;  %v81_v48 = vpop.permute.xlu0 %80  ;;  %372 = vperm.xlu0 %544, %v672_v6  }
  0x9d   :  { %v130_v56 = vsel %vm129_vm5, %v125_v50, %v81_v48  ;;  %v131_v62 = vsel %vm129_vm5, %v126_v59, %v83_v47 }
  0x9f   :  { %300 = vperm.xlu1 %534, %v679_v7  }
  0xa0   :  { %v87_v52 = vpop.permute.xlu1 %86  ;;  %v85_v53 = vpop.permute.xlu0 %84  ;;  %384 = vperm.xlu0 %544, %v684_v8  }
  0xa1   :  { %v133_v14 = vsel %vm129_vm5, %v128_v12, %v87_v52  ;;  %v132_v15 = vsel %vm129_vm5, %v127_v13, %v85_v53 }
  0xa3   :  { %304 = vperm.xlu1 %534, %v684_v8  }
  0xa4   :  { %v95_v63 = vpop.permute.xlu1 %94  ;;  %v93_v1 = vpop.permute.xlu0 %92  ;;  %547 = vset.pattern.permute.xlu0 %v594_v3 }
  0xa5   :  { %v136_v4 = vsel %vm134_vm6, %v131_v62, %v95_v63  ;;  %v135_v9 = vsel %vm134_vm6, %v130_v56, %v93_v1  ;;  %392 = vperm.xlu0 %547, %v667_v5  }
  0xa6   :  { %461 = vst [vmem:[#allocation2 + $0x10] sm:$0xff] %v136_v4  ;;  %462 = vst [vmem:[#allocation2 + $0x18] sm:$0xff] %v136_v4 }
  0xa7   :  { %459 = vst [vmem:[#allocation2] sm:$0xff] %v135_v9  ;;  %460 = vst [vmem:[#allocation2 + $0x8] sm:$0xff] %v135_v9  ;;  %537 = vset.pattern.permute.xlu1 %v589_v24 }
  0xa8   :  { %312 = vperm.xlu1 %537, %v667_v5   ;;  %v99_v16 = vpop.permute.xlu1 %98  ;;  %v97_v17 = vpop.permute.xlu0 %96 }
  0xa9   :  { %v138_v18 = vsel %vm134_vm6, %v133_v14, %v99_v16  ;;  %v137_v19 = vsel %vm134_vm6, %v132_v15, %v97_v17 }
  0xaa   :  { %465 = vst [vmem:[#allocation2 + $0x30] sm:$0xff] %v138_v18  ;;  %466 = vst [vmem:[#allocation2 + $0x38] sm:$0xff] %v138_v18 }
  0xab   :  { %463 = vst [vmem:[#allocation2 + $0x20] sm:$0xff] %v137_v19  ;;  %464 = vst [vmem:[#allocation2 + $0x28] sm:$0xff] %v137_v19 }
  0xac   :  { %316 = vperm.xlu1 %537, %v679_v7  }
  0xb0   :  { %538 = vset.pattern.permute.xlu1 %v590_v31 }
  0xb1   :  { %324 = vperm.xlu1 %538, %v672_v6  }
  0xb5   :  { %332 = vperm.xlu1 %538, %v679_v7  }
  0xb9   :  { %336 = vperm.xlu1 %538, %v684_v8   ;;  %v151_v20 = vpop.permute.xlu1 %150  ;;  %v146_v22 = vpop.permute.xlu0 %145 }
  0xbd   :  { %541 = vset.pattern.permute.xlu1 %v591_v34  ;;  %v156_v21 = vpop.permute.xlu1 %155  ;;  %v161_v24 = vpop.permute.xlu0 %160 }
  0xbe   :  { %344 = vperm.xlu1 %541, %v667_v5  }
  0xc2   :  { %348 = vperm.xlu1 %541, %v679_v7   ;;  %v165_v23 = vpop.permute.xlu1 %164  ;;  %v169_v27 = vpop.permute.xlu0 %168 }
  0xc3   :  { %v404_v43 = vsel %vm104_vm0, %v151_v20, %v169_v27 }
  0xc6   :  { %542 = vset.pattern.permute.xlu1 %v592_v41  ;;  %v173_v25 = vpop.permute.xlu1 %172 }
  0xc7   :  { %356 = vperm.xlu1 %542, %v672_v6   ;;  %v181_v29 = vpop.permute.xlu0 %180  ;;  %v405_v58 = vsel %vm104_vm0, %v156_v21, %v173_v25 }
  0xca   :  { %v177_v26 = vpop.permute.xlu1 %176 }
  0xcb   :  { %364 = vperm.xlu1 %542, %v679_v7   ;;  %v193_v31 = vpop.permute.xlu0 %192  ;;  %v406_v56 = vsel %vm104_vm0, %v161_v24, %v177_v26 }
  0xcc   :  { %v410_v59 = vsel %vm109_vm1, %v406_v56, %v193_v31 }
  0xcf   :  { %368 = vperm.xlu1 %542, %v684_v8   ;;  %v185_v28 = vpop.permute.xlu1 %184 }
  0xd0   :  { %v201_v34 = vpop.permute.xlu0 %200  ;;  %v408_v44 = vsel %vm109_vm1, %v404_v43, %v185_v28 }
  0xd1   :  { %v412_v46 = vsel %vm114_vm2, %v408_v44, %v201_v34 }
  0xd3   :  { %545 = vset.pattern.permute.xlu1 %v593_v45  ;;  %v189_v30 = vpop.permute.xlu1 %188 }
  0xd4   :  { %376 = vperm.xlu1 %545, %v667_v5   ;;  %v409_v60 = vsel %vm109_vm1, %v405_v58, %v189_v30 }
  0xd5   :  { %v213_v36 = vpop.permute.xlu0 %212 }
  0xd8   :  { %380 = vperm.xlu1 %545, %v679_v7   ;;  %v197_v32 = vpop.permute.xlu1 %196 }
  0xd9   :  { %v225_v38 = vpop.permute.xlu0 %224 }
  0xdc   :  { %546 = vset.pattern.permute.xlu1 %v594_v3  ;;  %v205_v33 = vpop.permute.xlu1 %204 }
  0xdd   :  { %388 = vperm.xlu1 %546, %v672_v6   ;;  %v413_v63 = vsel %vm114_vm2, %v409_v60, %v205_v33 }
  0xde   :  { %v233_v40 = vpop.permute.xlu0 %232 }
  0xe0   :  { %v209_v35 = vpop.permute.xlu1 %208 }
  0xe1   :  { %396 = vperm.xlu1 %546, %v679_v7   ;;  %v414_v1 = vsel %vm114_vm2, %v410_v59, %v209_v35 }
  0xe2   :  { %v418_v4 = vsel %vm119_vm3, %v414_v1, %v225_v38 }
  0xe3   :  { %v245_v41 = vpop.permute.xlu0 %244 }
  0xe5   :  { %400 = vperm.xlu1 %546, %v684_v8   ;;  %v217_v37 = vpop.permute.xlu1 %216  ;;  %v403_v8 = vsel %vm104_vm0, %v146_v22, %v165_v23 }
  0xe6   :  { %v416_v7 = vsel %vm119_vm3, %v412_v46, %v217_v37  ;;  %v407_v50 = vsel %vm109_vm1, %v403_v8, %v181_v29 }
  0xe7   :  { %v257_v45 = vpop.permute.xlu0 %256  ;;  %v420_v48 = vsel %vm124_vm4, %v416_v7, %v233_v40  ;;  %v411_v52 = vsel %vm114_vm2, %v407_v50, %v197_v32 }
  0xe8   :  { %v415_v55 = vsel %vm119_vm3, %v411_v52, %v213_v36 }
  0xe9   :  { %v221_v39 = vpop.permute.xlu1 %220 }
  0xea   :  { %v417_v0 = vsel %vm119_vm3, %v413_v63, %v221_v39 }
  0xec   :  { %v265_v47 = vpop.permute.xlu0 %264 }
  0xee   :  { %v229_v5 = vpop.permute.xlu1 %228 }
  0xef   :  { %v419_v57 = vsel %vm124_vm4, %v415_v55, %v229_v5 }
  0xf0   :  { %v423_v61 = vsel %vm129_vm5, %v419_v57, %v245_v41 }
  0xf1   :  { %v277_v19 = vpop.permute.xlu0 %276 }
  0xf2   :  { %v237_v42 = vpop.permute.xlu1 %236 }
  0xf3   :  { %v421_v2 = vsel %vm124_vm4, %v417_v0, %v237_v42 }
  0xf5   :  { %v289_v21 = vpop.permute.xlu0 %288 }
  0xf6   :  { %v241_v6 = vpop.permute.xlu1 %240 }
  0xf7   :  { %v422_v11 = vsel %vm124_vm4, %v418_v4, %v241_v6 }
  0xf8   :  { %v426_v13 = vsel %vm129_vm5, %v422_v11, %v257_v45 }
  0xfa   :  { %v297_v24 = vpop.permute.xlu0 %296 }
  0xfb   :  { %v249_v49 = vpop.permute.xlu1 %248 }
  0xfc   :  { %v424_v51 = vsel %vm129_vm5, %v420_v48, %v249_v49 }
  0xfd   :  { %v428_v53 = vsel %vm134_vm6, %v424_v51, %v265_v47 }
  0xfe   :  { %469 = vst [vmem:[#allocation2 + $0x50] sm:$0xff] %v428_v53 }
  0xff   :  { %v253_v54 = vpop.permute.xlu1 %252  ;;  %v309_v26 = vpop.permute.xlu0 %308 }
 0x100   :  { %v425_v9 = vsel %vm129_vm5, %v421_v2, %v253_v54 }
 0x103   :  { %v321_v27 = vpop.permute.xlu0 %320 }
 0x104   :  { %v261_v62 = vpop.permute.xlu1 %260 }
 0x105   :  { %v427_v3 = vsel %vm134_vm6, %v423_v61, %v261_v62 }
 0x106   :  { %467 = vst [vmem:[#allocation2 + $0x40] sm:$0xff] %v427_v3 }
 0x108   :  { %v269_v10 = vpop.permute.xlu1 %268  ;;  %v329_v30 = vpop.permute.xlu0 %328 }
 0x109   :  { %v429_v12 = vsel %vm134_vm6, %v425_v9, %v269_v10 }
 0x10a   :  { %471 = vst [vmem:[#allocation2 + $0x60] sm:$0xff] %v429_v12 }
 0x10c   :  { %v273_v14 = vpop.permute.xlu1 %272 }
 0x10d   :  { %v430_v15 = vsel %vm134_vm6, %v426_v13, %v273_v14  ;;  %v341_v32 = vpop.permute.xlu0 %340 }
 0x10e   :  { %473 = vst [vmem:[#allocation2 + $0x70] sm:$0xff] %v430_v15 }
 0x111   :  { %v281_v16 = vpop.permute.xlu1 %280  ;;  %v353_v34 = vpop.permute.xlu0 %352 }
 0x112   :  { %v432_v40 = vsel %vm104_vm0, %v281_v16, %v297_v24 }
 0x115   :  { %v285_v17 = vpop.permute.xlu1 %284 }
 0x116   :  { %v361_v36 = vpop.permute.xlu0 %360 }
 0x11a   :  { %v293_v18 = vpop.permute.xlu1 %292 }
 0x11b   :  { %v373_v38 = vpop.permute.xlu0 %372  ;;  %v431_v45 = vsel %vm104_vm0, %v277_v19, %v293_v18 }
 0x11c   :  { %v435_v47 = vsel %vm109_vm1, %v431_v45, %v309_v26 }
 0x11e   :  { %v301_v20 = vpop.permute.xlu1 %300 }
 0x11f   :  { %v385_v41 = vpop.permute.xlu0 %384  ;;  %v433_v54 = vsel %vm104_vm0, %v285_v17, %v301_v20 }
 0x122   :  { %v305_v22 = vpop.permute.xlu1 %304 }
 0x123   :  { %v434_v52 = vsel %vm104_vm0, %v289_v21, %v305_v22 }
 0x124   :  { %v393_v6 = vpop.permute.xlu0 %392  ;;  %v438_v55 = vsel %vm109_vm1, %v434_v52, %v321_v27 }
 0x127   :  { %v313_v23 = vpop.permute.xlu1 %312 }
 0x128   :  { %v436_v5 = vsel %vm109_vm1, %v432_v40, %v313_v23 }
 0x129   :  { %v440_v43 = vsel %vm114_vm2, %v436_v5, %v329_v30 }
 0x12b   :  { %v317_v25 = vpop.permute.xlu1 %316 }
 0x12c   :  { %v437_v56 = vsel %vm109_vm1, %v433_v54, %v317_v25 }
 0x130   :  { %v325_v28 = vpop.permute.xlu1 %324 }
 0x131   :  { %v439_v48 = vsel %vm114_vm2, %v435_v47, %v325_v28 }
 0x132   :  { %v443_v51 = vsel %vm119_vm3, %v439_v48, %v341_v32 }
 0x134   :  { %v333_v29 = vpop.permute.xlu1 %332 }
 0x135   :  { %v441_v59 = vsel %vm114_vm2, %v437_v56, %v333_v29 }
 0x138   :  { %v337_v31 = vpop.permute.xlu1 %336 }
 0x139   :  { %v442_v60 = vsel %vm114_vm2, %v438_v55, %v337_v31 }
 0x13a   :  { %v446_v1 = vsel %vm119_vm3, %v442_v60, %v353_v34 }
 0x13d   :  { %v345_v33 = vpop.permute.xlu1 %344 }
 0x13e   :  { %v444_v44 = vsel %vm119_vm3, %v440_v43, %v345_v33 }
 0x13f   :  { %v448_v46 = vsel %vm124_vm4, %v444_v44, %v361_v36 }
 0x141   :  { %v349_v35 = vpop.permute.xlu1 %348 }
 0x142   :  { %v445_v62 = vsel %vm119_vm3, %v441_v59, %v349_v35 }
 0x146   :  { %v357_v37 = vpop.permute.xlu1 %356 }
 0x147   :  { %v447_v53 = vsel %vm124_vm4, %v443_v51, %v357_v37 }
 0x148   :  { %v451_v57 = vsel %vm129_vm5, %v447_v53, %v373_v38 }
 0x14a   :  { %v365_v39 = vpop.permute.xlu1 %364 }
 0x14b   :  { %v449_v63 = vsel %vm124_vm4, %v445_v62, %v365_v39 }
 0x14e   :  { %v369_v42 = vpop.permute.xlu1 %368 }
 0x14f   :  { %v450_v2 = vsel %vm124_vm4, %v446_v1, %v369_v42 }
 0x150   :  { %v454_v9 = vsel %vm129_vm5, %v450_v2, %v385_v41 }
 0x153   :  { %v377_v7 = vpop.permute.xlu1 %376 }
 0x154   :  { %v452_v8 = vsel %vm129_vm5, %v448_v46, %v377_v7 }
 0x155   :  { %v456_v49 = vsel %vm134_vm6, %v452_v8, %v393_v6 }
 0x156   :  { %470 = vst [vmem:[#allocation2 + $0x58] sm:$0xff] %v456_v49 }
 0x157   :  { %v381_v50 = vpop.permute.xlu1 %380 }
 0x158   :  { %v453_v3 = vsel %vm129_vm5, %v449_v63, %v381_v50 }
 0x15c   :  { %v389_v58 = vpop.permute.xlu1 %388 }
 0x15d   :  { %v455_v61 = vsel %vm134_vm6, %v451_v57, %v389_v58 }
 0x15e   :  { %468 = vst [vmem:[#allocation2 + $0x48] sm:$0xff] %v455_v61 }
 0x160   :  { %v397_v0 = vpop.permute.xlu1 %396 }
 0x161   :  { %v457_v4 = vsel %vm134_vm6, %v453_v3, %v397_v0 }
 0x162   :  { %472 = vst [vmem:[#allocation2 + $0x68] sm:$0xff] %v457_v4 }
 0x164   :  { %v401_v10 = vpop.permute.xlu1 %400 }
 0x165   :  { %v458_v11 = vsel %vm134_vm6, %v454_v9, %v401_v10 }
 0x166   :  { %474 = vst [vmem:[#allocation2 + $0x78] sm:$0xff] %v458_v11 }
 0x167   :  { %559 = shalt.err (!%p556_p4)
}
 0x168   :  { %s560_s7 = scalar_lea.hbm %s879_s2, 2048 }
 0x169   :  { %p561_p5 = scmp.ne.s32.totalorder %s879_s2, %s560_s7  ;;  %p564_p6 = scmp.lt.u32.totalorder %s560_s7, %s879_s2 }
 0x16b   :  { %p566_p7 = pnand %p564_p6, %p561_p5 }
 0x16d   :  { %569 = shalt.err (!%p566_p7)
}
 0x16e   :  { %s596_s12 = smov 256  }
 0x16f   :  { %486 = dma.vmem_to_hbm [thread:$0]  %s481_s3, 2048, %s879_s2, [#allocation3], %s596_s12, %s596_s12, %s572_s13  }
 0x170   :  { %570 = dma.done.wait [#allocation3], 2048  }
 0x171   :  { %571 = vsyncadd [#allocation3], 4294965248 }
 0x172   :  { %490 = vsyncpa [#allocation3], 1 }

</bundles_post_ra>
